<compile_context>
chip_gen: v6e
topology: v6e:2x2x1
jax: 0.10.0
libtpu: 0.0.40
codegen_flags: <defaults>
</compile_context>

<pallas_src>
import jax
import jax.numpy as jnp
from jax.experimental import pallas as pl
from jax.experimental.pallas import tpu as pltpu


def _round_up(n, m):
    return (n + m - 1) // m * m


# ---------------------------------------------------------------------------
# Pallas kernel: fused (encoder-linear folded) MLP decoder forward pass
# ---------------------------------------------------------------------------
def _ae_mlp_kernel(x_ref, w01_ref, b01_ref, w2_ref, b2_ref, w3_ref, b3_ref, o_ref):
    # x is f32 in HBM/VMEM; cast to bf16 in-register (MXU operand dtype), accumulate in f32.
    x = x_ref[...].astype(jnp.bfloat16)

    # Layer 1 (encoder linear folded in): h = relu(x @ (We@W1) + (be@W1 + b1))
    h = jnp.dot(x, w01_ref[...], preferred_element_type=jnp.float32) + b01_ref[...]
    h = jnp.maximum(h, 0.0)

    # Layer 2: Linear -> ReLU
    h = jnp.dot(h.astype(jnp.bfloat16), w2_ref[...],
                preferred_element_type=jnp.float32) + b2_ref[...]
    h = jnp.maximum(h, 0.0)

    # Layer 3: Linear (pixel output)
    y = jnp.dot(h.astype(jnp.bfloat16), w3_ref[...],
                preferred_element_type=jnp.float32) + b3_ref[...]

    o_ref[...] = y.astype(o_ref.dtype)


def fuse_params(params):
    """One-time param prep: fold encoder linear into first decoder layer, cast to MXU dtypes.

    params = (we, be, w1, b1, w2, b2, w3, b3) in f32.
    returns (w01_bf16, b01_f32, w2_bf16, b2_f32, w3_bf16, b3_f32)
    """
    we, be, w1, b1, w2, b2, w3, b3 = params
    w01 = we @ w1                    # [in_dim, hidden0], folded in f32
    b01 = be @ w1 + b1               # [1, hidden0]
    return (w01.astype(jnp.bfloat16), b01.astype(jnp.float32),
            w2.astype(jnp.bfloat16), b2.astype(jnp.float32),
            w3.astype(jnp.bfloat16), b3.astype(jnp.float32))


def _choose_tile(B, block_m):
    """Batch tile size: multiple of 8 (f32 sublane), capped so v7x gets >=2 grid steps."""
    if B <= 8:
        return B                                # full-dim block (tiny batch)
    return min(block_m, _round_up(pl.cdiv(B, 2), 8))


def mlp_autoencoder_pixels(x, fused_params, *, block_m=1024, out_dtype=jnp.float32):
    """x: [B, input_dim] float32 -> [B, output_dim] (default f32)."""
    w01, b01, w2, b2, w3, b3 = fused_params
    B, in_dim = x.shape
    out_dim = w3.shape[1]

    tm = _choose_tile(B, block_m)
    num_tiles = pl.cdiv(B, tm)       # last block partially masked if B % tm != 0

    weights_biases = (w01, b01, w2, b2, w3, b3)

    # x / out blocks move with the grid index; weights & biases are constant blocks
    # (VMEM-resident across grid steps, ~50 KB total).
    in_specs = [pl.BlockSpec((tm, in_dim), lambda i: (i, 0))]
    in_specs += [pl.BlockSpec(op.shape, lambda i: (0, 0)) for op in weights_biases]
    out_spec = pl.BlockSpec((tm, out_dim), lambda i: (i, 0))

    return pl.pallas_call(
        _ae_mlp_kernel,
        out_shape=jax.ShapeDtypeStruct((B, out_dim), out_dtype),
        grid_spec=pl.GridSpec(
            grid=(num_tiles,),
            in_specs=in_specs,
            out_specs=out_spec,
        ),
        compiler_params=pltpu.CompilerParams(
            dimension_semantics=("parallel",),   # megacore-sharded batch axis
            vmem_limit_bytes=16 * 1024 * 1024,   # actual footprint is a few MiB
        ),
    )(x, *weights_biases)


# ---------------------------------------------------------------------------
# Deterministic parameter initialization (PyTorch nn.Linear-style uniform)
# ---------------------------------------------------------------------------
def _linear_init(key, fan_in, fan_out):
    kw, kb = jax.random.split(key)
    bound = 1.0 / jnp.sqrt(jnp.asarray(fan_in, jnp.float32))
    w = jax.random.uniform(kw, (fan_in, fan_out), jnp.float32, -bound, bound)
    b = jax.random.uniform(kb, (1, fan_out), jnp.float32, -bound, bound)
    return w, b


def make_params(key, input_dim, latent_dim, hidden_dims, output_dim):
    keys = jax.random.split(key, 1 + len(hidden_dims) + 1)
    # encoder stand-in linear: input_dim -> latent_dim
    we, be = _linear_init(keys[0], input_dim, latent_dim)
    # decoder MLP: latent_dim -> hidden_dims[0] -> hidden_dims[1] -> output_dim
    w1, b1 = _linear_init(keys[1], latent_dim, hidden_dims[0])
    w2, b2 = _linear_init(keys[2], hidden_dims[0], hidden_dims[1])
    w3, b3 = _linear_init(keys[3], hidden_dims[1], output_dim)
    return (we, be, w1, b1, w2, b2, w3, b3)


# ---------------------------------------------------------------------------
# References for correctness
# ---------------------------------------------------------------------------
def _reference_f32(x, params):
    we, be, w1, b1, w2, b2, w3, b3 = params
    z = x @ we + be
    h = jnp.maximum(z @ w1 + b1, 0.0)
    h = jnp.maximum(h @ w2 + b2, 0.0)
    return h @ w3 + b3


def _reference_bf16_fused(x, fused_params):
    # Mirrors the kernel's bf16-operand / f32-accumulate numerics on the folded params.
    w01, b01, w2, b2, w3, b3 = fused_params
    bf = jnp.bfloat16
    h = jnp.maximum(jnp.dot(x.astype(bf), w01, preferred_element_type=jnp.float32) + b01, 0.0)
    h = jnp.maximum(jnp.dot(h.astype(bf), w2, preferred_element_type=jnp.float32) + b2, 0.0)
    return jnp.dot(h.astype(bf), w3, preferred_element_type=jnp.float32) + b3


if __name__ == "__main__":
    # model_args (small, consistent with the module):
    #   data.image_size = (1, 16, 16)  -> decoder output_dim = 256
    #   decoder_args: d_input (latent) = 32, d_hidden = [64, 64], activation = relu
    #   encoder input_dim = 48
    input_dim, latent_dim = 48, 32
    hidden_dims = [64, 64]
    output_dim = 1 * 16 * 16  # 256

    key = jax.random.PRNGKey(0)
    kx, kp = jax.random.split(key)
    params = make_params(kp, input_dim, latent_dim, hidden_dims, output_dim)
    fused = fuse_params(params)     # one-time: fold encoder linear, cast to bf16/f32

    ok = True
    # Two batch sizes: the tiny one from the module test, and one that exercises a
    # partial (masked) last block with the tiled grid (37 % 24 != 0).
    for B in (4, 37):
        x = jax.random.normal(jax.random.fold_in(kx, B), (B, input_dim), jnp.float32)

        out = mlp_autoencoder_pixels(x, fused)
        out = jax.block_until_ready(out)

        ref_bf = _reference_bf16_fused(x, fused)
        ref_f32 = _reference_f32(x, params)

        assert out.shape == (B, output_dim), out.shape
        assert out.dtype == jnp.float32, out.dtype
        # Tight check against the same bf16-operand / folded numerics.
        assert jnp.allclose(out, ref_bf, atol=2e-2, rtol=2e-2), float(
            jnp.max(jnp.abs(out - ref_bf)))
        # Looser sanity check against the pure-f32 unfused reference (module semantics).
        assert jnp.allclose(out, ref_f32, atol=8e-2, rtol=8e-2), float(
            jnp.max(jnp.abs(out - ref_f32)))
        ok = ok and True

    if ok:
        print("KERNEL_OK")
</pallas_src>

<mosaic_0001>
module attributes {stable_mosaic.version = 11 : i64} {
  func.func @_ae_mlp_kernel(%arg0: i32, %arg1: memref<4x48xf32, #tpu.memory_space<vmem>>, %arg2: memref<48x64xbf16, #tpu.memory_space<vmem>>, %arg3: memref<1x64xf32, #tpu.memory_space<vmem>>, %arg4: memref<64x64xbf16, #tpu.memory_space<vmem>>, %arg5: memref<1x64xf32, #tpu.memory_space<vmem>>, %arg6: memref<64x256xbf16, #tpu.memory_space<vmem>>, %arg7: memref<1x256xf32, #tpu.memory_space<vmem>>, %arg8: memref<4x256xf32, #tpu.memory_space<vmem>>) attributes {dimension_semantics = [#tpu.dimension_semantics<parallel>], iteration_bounds = array<i64: 1>, scalar_prefetch = 0 : i64, scratch_operands = 0 : i64, tpu.core_type = #tpu.core_type<tc>, window_params = [{transform_indices = @transform_0, window_bounds = array<i64: 4, 48>}, {pipeline_mode = #tpu.pipeline_mode<synchronous>, transform_indices = @transform_1, window_bounds = array<i64: 48, 64>}, {pipeline_mode = #tpu.pipeline_mode<synchronous>, transform_indices = @transform_2, window_bounds = array<i64: 1, 64>}, {pipeline_mode = #tpu.pipeline_mode<synchronous>, transform_indices = @transform_3, window_bounds = array<i64: 64, 64>}, {pipeline_mode = #tpu.pipeline_mode<synchronous>, transform_indices = @transform_4, window_bounds = array<i64: 1, 64>}, {pipeline_mode = #tpu.pipeline_mode<synchronous>, transform_indices = @transform_5, window_bounds = array<i64: 64, 256>}, {pipeline_mode = #tpu.pipeline_mode<synchronous>, transform_indices = @transform_6, window_bounds = array<i64: 1, 256>}, {transform_indices = @transform_7, window_bounds = array<i64: 4, 256>}]} {
    %c0 = arith.constant 0 : index
    %c0_0 = arith.constant 0 : index
    %0 = vector.load %arg1[%c0, %c0_0] : memref<4x48xf32, #tpu.memory_space<vmem>>, vector<4x48xf32>
    %1 = arith.truncf %0 : vector<4x48xf32> to vector<4x48xbf16>
    %c0_1 = arith.constant 0 : index
    %c0_2 = arith.constant 0 : index
    %2 = vector.load %arg2[%c0_1, %c0_2] : memref<48x64xbf16, #tpu.memory_space<vmem>>, vector<48x64xbf16>
    %cst = arith.constant dense<0.000000e+00> : vector<4x64xf32>
    %3 = tpu.matmul %1, %2, %cst {dimension_numbers = #tpu.dot_dimension_numbers<[1], [0], [0], [1], [0, 0, 1, 1], [], []>} : vector<4x48xbf16>, vector<48x64xbf16>, vector<4x64xf32> -> vector<4x64xf32>
    %c0_3 = arith.constant 0 : index
    %c0_4 = arith.constant 0 : index
    %4 = vector.load %arg3[%c0_3, %c0_4] : memref<1x64xf32, #tpu.memory_space<vmem>>, vector<1x64xf32>
    %5 = vector.broadcast %4 : vector<1x64xf32> to vector<4x64xf32>
    %6 = arith.addf %3, %5 : vector<4x64xf32>
    %cst_5 = arith.constant 0.000000e+00 : f32
    %7 = vector.broadcast %cst_5 : f32 to vector<4x64xf32>
    %8 = arith.maximumf %6, %7 : vector<4x64xf32>
    %9 = arith.truncf %8 : vector<4x64xf32> to vector<4x64xbf16>
    %c0_6 = arith.constant 0 : index
    %c0_7 = arith.constant 0 : index
    %10 = vector.load %arg4[%c0_6, %c0_7] : memref<64x64xbf16, #tpu.memory_space<vmem>>, vector<64x64xbf16>
    %cst_8 = arith.constant dense<0.000000e+00> : vector<4x64xf32>
    %11 = tpu.matmul %9, %10, %cst_8 {dimension_numbers = #tpu.dot_dimension_numbers<[1], [0], [0], [1], [0, 0, 1, 1], [], []>} : vector<4x64xbf16>, vector<64x64xbf16>, vector<4x64xf32> -> vector<4x64xf32>
    %c0_9 = arith.constant 0 : index
    %c0_10 = arith.constant 0 : index
    %12 = vector.load %arg5[%c0_9, %c0_10] : memref<1x64xf32, #tpu.memory_space<vmem>>, vector<1x64xf32>
    %13 = vector.broadcast %12 : vector<1x64xf32> to vector<4x64xf32>
    %14 = arith.addf %11, %13 : vector<4x64xf32>
    %cst_11 = arith.constant 0.000000e+00 : f32
    %15 = vector.broadcast %cst_11 : f32 to vector<4x64xf32>
    %16 = arith.maximumf %14, %15 : vector<4x64xf32>
    %17 = arith.truncf %16 : vector<4x64xf32> to vector<4x64xbf16>
    %c0_12 = arith.constant 0 : index
    %c0_13 = arith.constant 0 : index
    %18 = vector.load %arg6[%c0_12, %c0_13] : memref<64x256xbf16, #tpu.memory_space<vmem>>, vector<64x256xbf16>
    %cst_14 = arith.constant dense<0.000000e+00> : vector<4x256xf32>
    %19 = tpu.matmul %17, %18, %cst_14 {dimension_numbers = #tpu.dot_dimension_numbers<[1], [0], [0], [1], [0, 0, 1, 1], [], []>} : vector<4x64xbf16>, vector<64x256xbf16>, vector<4x256xf32> -> vector<4x256xf32>
    %c0_15 = arith.constant 0 : index
    %c0_16 = arith.constant 0 : index
    %20 = vector.load %arg7[%c0_15, %c0_16] : memref<1x256xf32, #tpu.memory_space<vmem>>, vector<1x256xf32>
    %21 = vector.broadcast %20 : vector<1x256xf32> to vector<4x256xf32>
    %22 = arith.addf %19, %21 : vector<4x256xf32>
    %c0_17 = arith.constant 0 : index
    %c0_18 = arith.constant 0 : index
    %23 = vector.load %arg8[%c0_17, %c0_18] : memref<4x256xf32, #tpu.memory_space<vmem>>, vector<4x256xf32>
    tpu.vector_store %arg8[%c0_17, %c0_18], %22 {strides = array<i32>} : memref<4x256xf32, #tpu.memory_space<vmem>>, vector<4x256xf32>,
    return
  }
  func.func @transform_0(%arg0: i32) -> (i32, i32) {
    %c0_i32 = arith.constant 0 : i32
    %c0_i32_0 = arith.constant 0 : i32
    return %arg0, %c0_i32 : i32, i32
  }
  func.func @transform_1(%arg0: i32) -> (i32, i32) {
    %c0_i32 = arith.constant 0 : i32
    %c0_i32_0 = arith.constant 0 : i32
    %c0_i32_1 = arith.constant 0 : i32
    return %c0_i32, %c0_i32_0 : i32, i32
  }
  func.func @transform_2(%arg0: i32) -> (i32, i32) {
    %c0_i32 = arith.constant 0 : i32
    %c0_i32_0 = arith.constant 0 : i32
    %c0_i32_1 = arith.constant 0 : i32
    return %c0_i32, %c0_i32_0 : i32, i32
  }
  func.func @transform_3(%arg0: i32) -> (i32, i32) {
    %c0_i32 = arith.constant 0 : i32
    %c0_i32_0 = arith.constant 0 : i32
    %c0_i32_1 = arith.constant 0 : i32
    return %c0_i32, %c0_i32_0 : i32, i32
  }
  func.func @transform_4(%arg0: i32) -> (i32, i32) {
    %c0_i32 = arith.constant 0 : i32
    %c0_i32_0 = arith.constant 0 : i32
    %c0_i32_1 = arith.constant 0 : i32
    return %c0_i32, %c0_i32_0 : i32, i32
  }
  func.func @transform_5(%arg0: i32) -> (i32, i32) {
    %c0_i32 = arith.constant 0 : i32
    %c0_i32_0 = arith.constant 0 : i32
    %c0_i32_1 = arith.constant 0 : i32
    return %c0_i32, %c0_i32_0 : i32, i32
  }
  func.func @transform_6(%arg0: i32) -> (i32, i32) {
    %c0_i32 = arith.constant 0 : i32
    %c0_i32_0 = arith.constant 0 : i32
    %c0_i32_1 = arith.constant 0 : i32
    return %c0_i32, %c0_i32_0 : i32, i32
  }
  func.func @transform_7(%arg0: i32) -> (i32, i32) {
    %c0_i32 = arith.constant 0 : i32
    %c0_i32_0 = arith.constant 0 : i32
    return %arg0, %c0_i32 : i32, i32
  }
}

</mosaic_0001>

<bundles_post_ra>
// kernel: tpu_custom_call.1
= control target key start
LH: loop header
LB: loop body
LE: loop exit
PB: predicated region body
PF: predicated region fallthrough
CT: control target
= control target key end

     0   :  { %12 = vsyncpa [#allocation3], 0  ;;  %s639_s0 = inlined_call_operand.hbm [shape: f32[4,48], index: 0, kind: input, shape index: {}]   ;;  %s640_s1 = inlined_call_operand.hbm [shape: bf16[48,64], index: 1, kind: input, shape index: {}]   ;;  %s641_s2 = inlined_call_operand.vmem [shape: f32[1,64], index: 2, kind: input, shape index: {}]   ;;  %s642_s3 = inlined_call_operand.hbm [shape: bf16[64,64], index: 3, kind: input, shape index: {}]   ;;  %s643_s4 = inlined_call_operand.vmem [shape: f32[1,64], index: 4, kind: input, shape index: {}]   ;;  %s644_s5 = inlined_call_operand.hbm [shape: bf16[64,256], index: 5, kind: input, shape index: {}]   ;;  %s645_s6 = inlined_call_operand.vmem [shape: f32[1,256], index: 6, kind: input, shape index: {}]   ;;  %s646_s7 = inlined_call_operand.hbm [shape: f32[4,256], index: 7, kind: output, shape index: {}]  }
   0x1   :  { %13 = vsyncpa [#allocation6], 0 }
   0x2   :  { %14 = vsyncpa [#allocation9], 0 }
   0x3   :  { %15 = vsyncpa [#allocation4], 0  ;;  %s561_s24 = smov [#allocation5]  }
   0x4   :  { %s31_s25 = sshll.u32 %s561_s24, 4  ;;  %s32_s25 = int_to_ptr.vmem [resolvable:$true] %s31_s25 }
   0x5   :  { %s461_s26 = scalar_lea.vmem %s32_s25, 384  ;;  %p466_p1 = scmp.lt.s32.totalorder %s32_s25, %s32_s25 }
   0x6   :  { %p462_p0 = scmp.ne.s32.totalorder %s32_s25, %s461_s26  ;;  %p467_p2 = scmp.lt.s32.totalorder %s461_s26, %s461_s26 }
   0x8   :  { %p468_p3 = por %p467_p2, %p466_p1 }
   0xa   :  { %p469_p4 = pnand %p468_p3, %p462_p0 }
   0xc   :  { %472 = shalt.err (!%p469_p4)
}
   0xd   :  { %s562_s27 = smov 64   ;;  %s563_s28 = smov 4  }
   0xe   :  { %37 = dma.hbm_to_vmem [thread:$0]  %s640_s1, 384, %s32_s25, [#allocation6], %s562_s27, %s562_s27, %s563_s28  }
   0xf   :  { %s564_s8 = smov [#allocation2]   ;;  %s565_s10 = smov [#allocation7]  }
  0x10   :  { %s22_s9 = sshll.u32 %s564_s8, 4  ;;  %s45_s11 = sshll.u32 %s565_s10, 4  ;;  %s23_s9 = int_to_ptr.vmem [resolvable:$true] %s22_s9  ;;  %s46_s11 = int_to_ptr.vmem [resolvable:$true] %s45_s11 }
  0x11   :  { %s481_s12 = scalar_lea.vmem %s23_s9, 64  ;;  %p486_p6 = scmp.lt.s32.totalorder %s23_s9, %s23_s9 }
  0x12   :  { %p482_p5 = scmp.ne.s32.totalorder %s23_s9, %s481_s12  ;;  %p487_p7 = scmp.lt.s32.totalorder %s481_s12, %s481_s12 }
  0x14   :  { %p488_p8 = por %p487_p7, %p486_p6 }
  0x16   :  { %p489_p9 = pnand %p488_p8, %p482_p5 }
  0x18   :  { %492 = shalt.err (!%p489_p9)
}
  0x19   :  { %25 = dma.hbm_to_vmem [thread:$0]  %s639_s0, 64, %s23_s9, [#allocation3]  }
  0x1a   :  { %s501_s15 = scalar_lea.vmem %s46_s11, 512  ;;  %p506_p11 = scmp.lt.s32.totalorder %s46_s11, %s46_s11 }
  0x1b   :  { %p502_p10 = scmp.ne.s32.totalorder %s46_s11, %s501_s15  ;;  %p507_p12 = scmp.lt.s32.totalorder %s501_s15, %s501_s15 }
  0x1d   :  { %p508_p13 = por %p507_p12, %p506_p11 }
  0x1f   :  { %p509_p0 = pnand %p508_p13, %p502_p10 }
  0x21   :  { %512 = shalt.err (!%p509_p0)
}
  0x22   :  { %51 = dma.hbm_to_vmem [thread:$0]  %s642_s3, 512, %s46_s11, [#allocation6], %s562_s27, %s562_s27, %s563_s28  }
  0x23   :  { %s566_s17 = smov [#allocation8]  }
  0x24   :  { %s59_s18 = sshll.u32 %s566_s17, 4  ;;  %s60_s18 = int_to_ptr.vmem [resolvable:$true] %s59_s18 }
  0x25   :  { %s521_s19 = scalar_lea.vmem %s60_s18, 1024  ;;  %p526_p2 = scmp.lt.s32.totalorder %s60_s18, %s60_s18 }
  0x26   :  { %p522_p1 = scmp.ne.s32.totalorder %s60_s18, %s521_s19  ;;  %p527_p3 = scmp.lt.s32.totalorder %s521_s19, %s521_s19 }
  0x28   :  { %p528_p4 = por %p527_p3, %p526_p2 }
  0x2a   :  { %p529_p5 = pnand %p528_p4, %p522_p1 }
  0x2c   :  { %532 = shalt.err (!%p529_p5)
}
  0x2d   :  { %s567_s0 = smov 128   ;;  %s568_s20 = smov 8  }
  0x2e   :  { %65 = dma.hbm_to_vmem [thread:$0]  %s644_s5, 1024, %s60_s18, [#allocation9], %s567_s0, %s567_s0, %s568_s20  }
  0x2f   :  { %553 = dma.done.wait [#allocation3], 64  }
  0x30   :  { %554 = vsyncadd [#allocation3], 4294967232 }
  0x31   :  { %555 = dma.done.wait [#allocation6], 896  }
  0x32   :  { %556 = vsyncadd [#allocation6], 4294966400 }
  0x33   :  { %557 = dma.done.wait [#allocation9], 1024  }
  0x34   :  { %558 = vsyncadd [#allocation9], 4294966272  ;;  %v569_v0 = vmov 0.0   ;;  %vm570_vm0 = vmmov 0   ;;  %v434_v1 = vld [vmem:[#allocation5 + $0x10] sm:$0xff]   ;;  %v435_v2 = vld [vmem:[#allocation5 + $0x8] sm:$0xff]   ;;  %v255_v35 = vlaneseq }
  0x35   :  { %400 = vmatprep.subr.bf16.mxu0 %v569_v0  ;;  %406 = vmatprep.mubr.msk.bf16.mxu0 %vm570_vm0, %v569_v0  ;;  %v436_v3 = vld [vmem:[#allocation5] sm:$0xff]   ;;  %v437_v4 = vld [vmem:[#allocation7 + $0x18] sm:$0xff]   ;;  %v81_v5 = vld [vmem:[#allocation2] sm:$0xf]  ;;  %vm114_vm1 = vcmask 392192   ;;  %vm199_vm2 = vcmask 523264  }
  0x36   :  { %410 = vmatprep.subr.bf16.mxu1 %v569_v0  ;;  %418 = vmatprep.mubr.msk.bf16.mxu1 %vm570_vm0, %v569_v0  ;;  %v438_v6 = vld [vmem:[#allocation7 + $0x10] sm:$0xff]   ;;  %v82_v7 = vpack.c.bf16 %v81_v5, %v81_v5  ;;  %v439_v8 = vld [vmem:[#allocation7 + $0x8] sm:$0xff]   ;;  %v440_v9 = vld [vmem:[#allocation7] sm:$0xff]   ;;  %v571_v26 = vmov 0   ;;  %v256_v36 = vshrl.u32 %v255_v35, 7 }
  0x37   :  { %401 = vmatpush3.bf16.msra.mxu0 %v434_v1  ;;  %411 = vmatpush3.bf16.msra.mxu1 %v437_v4  ;;  %v441_v10 = vld [vmem:[#allocation8 + $0x30] ss:$8 sps:$4 sm:$0xff]   ;;  %v443_v11 = vld [vmem:[#allocation8 + $0x34] ss:$8 sps:$4 sm:$0xff]   ;;  %v446_v12 = vld [vmem:[#allocation8 + $0x24] ss:$8 sps:$4 sm:$0xff]  }
  0x38   :  { %402 = vmatprep.subr.bf16.mxu0 %v569_v0  ;;  %412 = vmatprep.subr.bf16.mxu1 %v569_v0  ;;  %v444_v13 = vld [vmem:[#allocation8 + $0x20] ss:$8 sps:$4 sm:$0xff]   ;;  %v449_v14 = vld [vmem:[#allocation8 + $0x14] ss:$8 sps:$4 sm:$0xff]   ;;  %v447_v15 = vld [vmem:[#allocation8 + $0x10] ss:$8 sps:$4 sm:$0xff]  }
  0x39   :  { %v371_v16 = vld [vmem:[%s641_s2] ss:$0 sm:$0xff]  ;;  %v450_v25 = vld [vmem:[#allocation8] ss:$8 sps:$4 sm:$0xff]   ;;  %v257_v37 = vsub.s32 0, %v256_v36  ;;  %v261_v38 = vsub.s32 1, %v256_v36 }
  0x3a   :  { %v452_v24 = vld [vmem:[#allocation8 + $0x4] ss:$8 sps:$4 sm:$0xff]  }
  0x3b   :  { %403 = vmatpush3.bf16.msra.mxu0 %v435_v2  ;;  %413 = vmatpush3.bf16.msra.mxu1 %v438_v6  ;;  %v376_v27 = vld [vmem:[%s643_s4] ss:$0 sm:$0xff]  ;;  %s572_s4 = smov [#allocation10]  }
  0x3c   :  { %404 = vmatprep.subr.bf16.mxu0 %v569_v0  ;;  %414 = vmatprep.subr.bf16.mxu1 %v569_v0  ;;  %v253_v39 = vld [vmem:[%s645_s6] sm:$0x3]  ;;  %s360_s26 = sshll.u32 %s572_s4, 4  ;;  %s361_s26 = int_to_ptr.vmem [resolvable:$true] %s360_s26 }
  0x3d   :  { %v258_v40 = vrot.slane %v253_v39, %v257_v37  ;;  %v262_v41 = vrot.slane %v253_v39, %v261_v38  ;;  %s533_s27 = scalar_lea.vmem %s361_s26, 128  ;;  %p538_p7 = scmp.lt.s32.totalorder %s361_s26, %s361_s26 }
  0x3e   :  { %p534_p6 = scmp.ne.s32.totalorder %s361_s26, %s533_s27  ;;  %p539_p8 = scmp.lt.s32.totalorder %s533_s27, %s533_s27 }
  0x3f   :  { %405 = vmatpush3.bf16.msra.mxu0 %v436_v3  ;;  %415 = vmatpush3.bf16.msra.mxu1 %v439_v8 }
  0x40   :  { %416 = vmatprep.subr.bf16.mxu1 %v569_v0  ;;  %316 = vmatprep.subr.bf16.mxu0 %v443_v11  ;;  %p540_p9 = por %p539_p8, %p538_p7 }
  0x42   :  { %407 = vmatmul.mubr.msk.bf16.vlgmr.msra.gmra.mxu0 %vm114_vm1, %v82_v7  ;;  %p541_p10 = pnand %p540_p9, %p534_p6 }
  0x43   :  { %417 = vmatpush3.bf16.msra.mxu1 %v440_v9  ;;  %317 = vmatpush1.bf16.msra.mxu0 %v441_v10 }
  0x44   :  { %318 = vmatprep.subr.bf16.mxu0 %v446_v12  ;;  %340 = vmatprep.mubr.bf16.mxu0 %v571_v26 }
  0x47   :  { %319 = vmatpush1.bf16.msra.mxu0 %v444_v13 }
  0x48   :  { %320 = vmatprep.subr.bf16.mxu0 %v449_v14 }
  0x4b   :  { %321 = vmatpush1.bf16.msra.mxu0 %v447_v15 }
  0x4c   :  { %322 = vmatprep.subr.bf16.mxu0 %v452_v24 }
  0x4f   :  { %323 = vmatpush1.bf16.msra.mxu0 %v450_v25 }
 0x102   :  { %v152_v17 = vpop.f32.mrf.mxu0 }
 0x103   :  { %v153_v18 = vadd.f32 %v371_v16, %v152_v17 }
 0x104   :  { %v408_v19 = vpop.f32.mrf.mxu0 }
 0x105   :  { %v158_v20 = vmax.f32 %v153_v18, 0.0 }
 0x106   :  { %v155_v21 = vpop.f32.mrf.mxu0 }
 0x107   :  { %v159_v22 = vpack.c.bf16 %v158_v20, %v158_v20 }
 0x108   :  { %v409_v23 = vpop.f32.mrf.mxu0 }
 0x109   :  { %419 = vmatmul.mubr.msk.bf16.vlgmr.msra.gmra.mxu1 %vm199_vm2, %v159_v22 }
 0x1c9   :  { %v237_v28 = vpop.f32.mrf.mxu1 }
 0x1ca   :  { %v238_v29 = vadd.f32 %v376_v27, %v237_v28 }
 0x1cb   :  { %v420_v30 = vpop.f32.mrf.mxu1 }
 0x1cc   :  { %v243_v31 = vmax.f32 %v238_v29, 0.0 }
 0x1cd   :  { %v240_v32 = vpop.f32.mrf.mxu1 }
 0x1ce   :  { %v244_v33 = vpack.c.bf16 %v243_v31, %v243_v31 }
 0x1cf   :  { %v421_v34 = vpop.f32.mrf.mxu1 }
 0x1d0   :  { %390 = vmatmul.mubr.msk.bf16.vlgmr.msra.gmra.mxu0 %vm199_vm2, %v244_v33 }
 0x290   :  { %v342_v42 = vpop.f32.mrf.mxu0 }
 0x291   :  { %v343_v44 = vadd.f32 %v342_v42, %v258_v40 }
 0x292   :  { %v344_v43 = vpop.f32.mrf.mxu0 }
 0x293   :  { %v345_v45 = vadd.f32 %v344_v43, %v262_v41 }
 0x294   :  { %v346_v46 = vpop.f32.mrf.mxu0 }
 0x295   :  { %v351_v47 = vcombine.low %v343_v44, %v345_v45 }
 0x296   :  { %v347_v48 = vpop.f32.mrf.mxu0 }
 0x297   :  { %353 = vst [vmem:[#allocation10] sm:$0xff] %v351_v47 }
 0x298   :  { %544 = shalt.err (!%p541_p10)
}
 0x299   :  { %363 = dma.vmem_to_hbm [thread:$0]  %s361_s26, 128, %s646_s7, [#allocation4]  }
 0x29a   :  { %559 = dma.done.wait [#allocation4], 128  }
 0x29b   :  { %560 = vsyncadd [#allocation4], 4294967168 }
 0x29c   :  { %367 = vsyncpa [#allocation3], 1 }
 0x29d   :  { %368 = vsyncpa [#allocation6], 1 }
 0x29e   :  { %369 = vsyncpa [#allocation9], 1 }
 0x29f   :  { %370 = vsyncpa [#allocation4], 1 }

</bundles_post_ra>
